<compile_context>
chip_gen: v6e
topology: v6e:2x2x1
jax: 0.10.0
libtpu: 0.0.40
codegen_flags: <defaults>
</compile_context>

<pallas_src>
import functools
import math

import jax
import jax.numpy as jnp
from jax.experimental import pallas as pl
from jax.experimental.pallas import tpu as pltpu


def _combined_loss_kernel(t_ref, s_ref, y_ref,
                          bce_out_ref, sq_out_ref,
                          acc_bce, acc_sq,
                          *, temperature, row_tile, cols, inner_steps,
                          needs_mask, first_masked_block, full_rows, rem_cols):
    h = pl.program_id(0)   # parallel (megacore) axis
    i = pl.program_id(1)   # reduction axis

    @pl.when(i == 0)
    def _():
        acc_bce[...] = jnp.zeros_like(acc_bce)
        acc_sq[...] = jnp.zeros_like(acc_sq)

    t = t_ref[...].astype(jnp.float32)
    s = s_ref[...].astype(jnp.float32)
    y = y_ref[...].astype(jnp.float32)

    # Numerically-stable binary_cross_entropy_with_logits (elementwise; the
    # mean reduction happens in the wrapper):
    #   max(x, 0) - x*y + log(1 + exp(-|x|))
    bce = jnp.maximum(s, 0.0) - s * y + jnp.log(1.0 + jnp.exp(-jnp.abs(s)))

    # KD term: sigmoid(x) = 0.5*tanh(x/2) + 0.5, so
    #   sigmoid(s/T) - sigmoid(t/T) = 0.5*(tanh(s/(2T)) - tanh(t/(2T))).
    # Accumulate raw d*d; the 0.25 * T^2 / N scaling is applied once in the
    # wrapper (folded out of the inner loop).
    half_inv_t = jnp.float32(0.5 / temperature)
    d = jnp.tanh(s * half_inv_t) - jnp.tanh(t * half_inv_t)
    dd = d * d

    groups = row_tile // 8

    def accumulate(bce_v, dd_v):
        if groups == 1:
            acc_bce[...] = acc_bce[...] + bce_v
            acc_sq[...] = acc_sq[...] + dd_v
        else:
            # Sublane-aligned group sums: pure VALU adds into the small
            # (8, cols) accumulators (no cross-lane work per step).
            acc_bce[...] = acc_bce[...] + bce_v.reshape(groups, 8, cols).sum(axis=0)
            acc_sq[...] = acc_sq[...] + dd_v.reshape(groups, 8, cols).sum(axis=0)

    if needs_mask:  # static Python flag: only emitted when padding exists
        gb = h * inner_steps + i            # global block index along rows
        tail = gb >= first_masked_block     # only tail blocks hold padding

        @pl.when(tail)
        def _():
            g_row = gb * row_tile + jax.lax.broadcasted_iota(
                jnp.int32, (row_tile, cols), 0)
            col = jax.lax.broadcasted_iota(jnp.int32, (row_tile, cols), 1)
            valid = (g_row < full_rows) | ((g_row == full_rows) & (col < rem_cols))
            accumulate(jnp.where(valid, bce, 0.0), jnp.where(valid, dd, 0.0))

        @pl.when(jnp.logical_not(tail))
        def _():
            accumulate(bce, dd)
    else:
        accumulate(bce, dd)

    @pl.when(i == inner_steps - 1)
    def _():
        # Per-half partial sums; the cross-lane reduce runs once per half.
        bce_out_ref[...] = jnp.broadcast_to(jnp.sum(acc_bce[...]), (1, 8, 128))
        sq_out_ref[...] = jnp.broadcast_to(jnp.sum(acc_sq[...]), (1, 8, 128))


def _pick_lane_width(n_elems, lane_width):
    """Largest lane width (multiple of 128) dividing N, else lane_width."""
    for cand in (lane_width, 1024, 512, 256, 128):
        if cand % 128 == 0 and n_elems % cand == 0 and n_elems >= cand:
            return cand
    return max(128, lane_width)


def _auto_row_tile(cols, itemsizes, target_block_bytes=4 * 1024 * 1024):
    """Largest row tile whose block (at the widest input dtype) stays ~4 MiB.

    3 inputs x 2 pipeline buffers x <=4 MiB = <=24 MiB of input buffers plus
    two tiny (8, cols) f32 accumulators -> comfortably inside a 48 MiB scoped
    VMEM limit on v5e/v6e (128 MiB physical) and v7x (64 MiB physical/TC).
    """
    bytes_per_row = cols * max(itemsizes)
    t = target_block_bytes // bytes_per_row
    return max(8, (t // 8) * 8)


def combined_loss(teacher_logits, student_logits, labels, *,
                  temperature=2.0, alpha=0.5,
                  lane_width=512, row_tile=None,
                  vmem_limit_bytes=48 * 1024 * 1024):
    """Pallas implementation of BaseDistillation.combined_loss.

    Inputs of any (matching) shape / dtype (f32 / bf16 / int8 / bool).
    Returns (total_loss, task_loss, kd_loss) as scalar f32 arrays.
    """
    assert teacher_logits.shape == student_logits.shape == labels.shape
    n = int(math.prod(teacher_logits.shape)) if teacher_logits.shape else 1
    assert n >= 1

    cols = _pick_lane_width(n, int(lane_width))
    itemsizes = [teacher_logits.dtype.itemsize,
                 student_logits.dtype.itemsize,
                 labels.dtype.itemsize]

    rows_needed = -(-n // cols)
    if row_tile is None:
        row_tile = _auto_row_tile(cols, itemsizes)
    row_tile = int(row_tile)
    assert row_tile % 8 == 0, "row_tile must be a multiple of 8"
    row_tile = max(8, min(row_tile, ((rows_needed + 7) // 8) * 8))

    total_blocks = -(-rows_needed // row_tile)
    num_halves = 2 if total_blocks >= 2 else 1   # v7x megacore split (trivial on 1-TC chips)
    inner_steps = -(-total_blocks // num_halves)
    rows = num_halves * inner_steps * row_tile
    padded = rows * cols

    needs_mask = padded != n
    full_rows = n // cols
    rem_cols = n % cols
    first_masked_block = full_rows // row_tile

    def _prep(x):
        flat = x.reshape(-1)
        if padded != n:
            # TODO(synk): for huge inputs this pad is a full HBM copy; a
            # ragged-tail BlockSpec would avoid it.
            flat = jnp.pad(flat, (0, padded - n))
        return flat.reshape(rows, cols)

    t2 = _prep(teacher_logits)
    s2 = _prep(student_logits)
    y2 = _prep(labels)

    kernel = functools.partial(
        _combined_loss_kernel,
        temperature=float(temperature),
        row_tile=row_tile, cols=cols, inner_steps=inner_steps,
        needs_mask=needs_mask, first_masked_block=first_masked_block,
        full_rows=full_rows, rem_cols=rem_cols)

    in_blk = pl.BlockSpec((row_tile, cols),
                          lambda hh, ii: (hh * inner_steps + ii, 0))
    out_blk = pl.BlockSpec((1, 8, 128), lambda hh, ii: (hh, 0, 0))

    bce_part, sq_part = pl.pallas_call(
        kernel,
        out_shape=(jax.ShapeDtypeStruct((num_halves, 8, 128), jnp.float32),
                   jax.ShapeDtypeStruct((num_halves, 8, 128), jnp.float32)),
        grid_spec=pltpu.PrefetchScalarGridSpec(
            num_scalar_prefetch=0,
            grid=(num_halves, inner_steps),
            in_specs=[in_blk, in_blk, in_blk],
            out_specs=(out_blk, out_blk),
            scratch_shapes=[pltpu.VMEM((8, cols), jnp.float32),   # BCE partials
                            pltpu.VMEM((8, cols), jnp.float32)],  # KD partials
        ),
        compiler_params=pltpu.CompilerParams(
            dimension_semantics=("parallel", "arbitrary"),
            vmem_limit_bytes=vmem_limit_bytes),
    )(t2, s2, y2)

    # Final combine in the wrapper (per-half partials -> scalars).
    inv_n = 1.0 / n
    task = jnp.sum(bce_part[:, 0, 0]) * inv_n
    kd = jnp.sum(sq_part[:, 0, 0]) * (0.25 * float(temperature) ** 2 * inv_n)
    total = float(alpha) * task + (1.0 - float(alpha)) * kd
    return total, task, kd


def _reference(teacher_logits, student_logits, labels, temperature=2.0, alpha=0.5):
    """Pure-JAX reference matching the PyTorch semantics."""
    s = student_logits.astype(jnp.float32)
    t = teacher_logits.astype(jnp.float32)
    y = labels.astype(jnp.float32)
    bce = jnp.maximum(s, 0.0) - s * y + jnp.log1p(jnp.exp(-jnp.abs(s)))
    task = jnp.mean(bce)
    kd = jnp.mean((jax.nn.sigmoid(s / temperature)
                   - jax.nn.sigmoid(t / temperature)) ** 2) * temperature ** 2
    return alpha * task + (1.0 - alpha) * kd, task, kd


def _check(got, ref, name):
    assert jnp.allclose(got, ref, rtol=1e-5, atol=1e-5), (name, got, ref)


if __name__ == "__main__":
    # TODO(synk): teacher_model / student_model forward passes are abstract in
    # the PyTorch module and are not modeled here; only combined_loss is.
    key = jax.random.PRNGKey(0)
    k_t, k_s, k_y = jax.random.split(key, 3)

    # Case 1: small f32 logits + f32 labels (single block, masked padding).
    t1 = jax.random.normal(k_t, (8, 64), dtype=jnp.float32) * 2.0
    s1 = jax.random.normal(k_s, (8, 64), dtype=jnp.float32) * 2.0
    y1 = jax.random.bernoulli(k_y, 0.5, (8, 64)).astype(jnp.float32)
    total1, task1, kd1 = combined_loss(t1, s1, y1, temperature=2.0, alpha=0.5)
    jax.block_until_ready(total1)
    r_total1, r_task1, r_kd1 = _reference(t1, s1, y1, 2.0, 0.5)
    _check(total1, r_total1, "total1"); _check(task1, r_task1, "task1"); _check(kd1, r_kd1, "kd1")

    # Case 2: 4-D bf16 logits + int8 labels (reduced HBM bytes; lane-dense reshape).
    shape2 = (2, 4, 16, 16)
    t2 = (jax.random.normal(k_t, shape2, dtype=jnp.float32) * 2.0).astype(jnp.bfloat16)
    s2 = (jax.random.normal(k_s, shape2, dtype=jnp.float32) * 2.0).astype(jnp.bfloat16)
    y2 = jax.random.bernoulli(k_y, 0.5, shape2).astype(jnp.int8)
    total2, task2, kd2 = combined_loss(t2, s2, y2, temperature=2.0, alpha=0.5)
    jax.block_until_ready(total2)
    r_total2, r_task2, r_kd2 = _reference(t2, s2, y2, 2.0, 0.5)
    _check(total2, r_total2, "total2"); _check(task2, r_task2, "task2"); _check(kd2, r_kd2, "kd2")

    # Case 3: forced small row_tile -> multi-block grid, 2-way "parallel" split,
    # partially-valid and fully-padded tail blocks.
    shape3 = (272, 64)
    t3 = jax.random.normal(k_t, shape3, dtype=jnp.float32) * 2.0
    s3 = jax.random.normal(k_s, shape3, dtype=jnp.float32) * 2.0
    y3 = jax.random.bernoulli(k_y, 0.5, shape3).astype(jnp.int8)
    total3, task3, kd3 = combined_loss(t3, s3, y3, temperature=3.0, alpha=0.3, row_tile=8)
    jax.block_until_ready(total3)
    r_total3, r_task3, r_kd3 = _reference(t3, s3, y3, 3.0, 0.3)
    _check(total3, r_total3, "total3"); _check(task3, r_task3, "task3"); _check(kd3, r_kd3, "kd3")

    print("KERNEL_OK")
</pallas_src>

<mosaic_0001>
module attributes {stable_mosaic.version = 11 : i64} {
  func.func @_combined_loss_kernel(%arg0: i32, %arg1: i32, %arg2: memref<8x512xf32, #tpu.memory_space<vmem>>, %arg3: memref<8x512xf32, #tpu.memory_space<vmem>>, %arg4: memref<8x512xf32, #tpu.memory_space<vmem>>, %arg5: memref<1x8x128xf32, #tpu.memory_space<vmem>>, %arg6: memref<1x8x128xf32, #tpu.memory_space<vmem>>, %arg7: memref<8x512xf32, #tpu.memory_space<vmem>>, %arg8: memref<8x512xf32, #tpu.memory_space<vmem>>) attributes {dimension_semantics = [#tpu.dimension_semantics<parallel>, #tpu.dimension_semantics<arbitrary>], iteration_bounds = array<i64: 1, 1>, scalar_prefetch = 0 : i64, scratch_operands = 2 : i64, tpu.core_type = #tpu.core_type<tc>, window_params = [{transform_indices = @transform_0, window_bounds = array<i64: 8, 512>}, {transform_indices = @transform_1, window_bounds = array<i64: 8, 512>}, {transform_indices = @transform_2, window_bounds = array<i64: 8, 512>}, {transform_indices = @transform_3, window_bounds = array<i64: 1, 8, 128>}, {transform_indices = @transform_4, window_bounds = array<i64: 1, 8, 128>}]} {
    %c0_i32 = arith.constant 0 : i32
    %0 = arith.cmpi eq, %arg1, %c0_i32 : i32
    %1 = arith.extui %0 : i1 to i32
    %c0_i32_0 = arith.constant 0 : i32
    %2 = arith.cmpi ne, %1, %c0_i32_0 : i32
    scf.if %2 {
      %cst_15 = arith.constant 0.000000e+00 : f32
      %37 = vector.broadcast %cst_15 : f32 to vector<8x512xf32>
      %c0_16 = arith.constant 0 : index
      %c0_17 = arith.constant 0 : index
      %38 = vector.load %arg7[%c0_16, %c0_17] : memref<8x512xf32, #tpu.memory_space<vmem>>, vector<8x512xf32>
      tpu.vector_store %arg7[%c0_16, %c0_17], %37 {strides = array<i32>} : memref<8x512xf32, #tpu.memory_space<vmem>>, vector<8x512xf32>,
      %cst_18 = arith.constant 0.000000e+00 : f32
      %39 = vector.broadcast %cst_18 : f32 to vector<8x512xf32>
      %c0_19 = arith.constant 0 : index
      %c0_20 = arith.constant 0 : index
      %40 = vector.load %arg8[%c0_19, %c0_20] : memref<8x512xf32, #tpu.memory_space<vmem>>, vector<8x512xf32>
      tpu.vector_store %arg8[%c0_19, %c0_20], %39 {strides = array<i32>} : memref<8x512xf32, #tpu.memory_space<vmem>>, vector<8x512xf32>,
    } else {
    }
    %c0 = arith.constant 0 : index
    %c0_1 = arith.constant 0 : index
    %3 = vector.load %arg2[%c0, %c0_1] : memref<8x512xf32, #tpu.memory_space<vmem>>, vector<8x512xf32>
    %c0_2 = arith.constant 0 : index
    %c0_3 = arith.constant 0 : index
    %4 = vector.load %arg3[%c0_2, %c0_3] : memref<8x512xf32, #tpu.memory_space<vmem>>, vector<8x512xf32>
    %c0_4 = arith.constant 0 : index
    %c0_5 = arith.constant 0 : index
    %5 = vector.load %arg4[%c0_4, %c0_5] : memref<8x512xf32, #tpu.memory_space<vmem>>, vector<8x512xf32>
    %cst = arith.constant 0.000000e+00 : f32
    %6 = vector.broadcast %cst : f32 to vector<8x512xf32>
    %7 = arith.maximumf %4, %6 : vector<8x512xf32>
    %8 = arith.mulf %4, %5 : vector<8x512xf32>
    %9 = arith.subf %7, %8 : vector<8x512xf32>
    %10 = math.absf %4 : vector<8x512xf32>
    %cst_6 = arith.constant 0.000000e+00 : f32
    %11 = vector.broadcast %cst_6 : f32 to vector<8x512xf32>
    %12 = arith.subf %11, %10 : vector<8x512xf32>
    %13 = math.exp %12 : vector<8x512xf32>
    %cst_7 = arith.constant 1.000000e+00 : f32
    %14 = vector.broadcast %cst_7 : f32 to vector<8x512xf32>
    %15 = arith.addf %14, %13 : vector<8x512xf32>
    %16 = math.log %15 : vector<8x512xf32>
    %17 = arith.addf %9, %16 : vector<8x512xf32>
    %cst_8 = arith.constant 2.500000e-01 : f32
    %18 = vector.broadcast %cst_8 : f32 to vector<8x512xf32>
    %19 = arith.mulf %4, %18 : vector<8x512xf32>
    %20 = math.tanh %19 : vector<8x512xf32>
    %cst_9 = arith.constant 2.500000e-01 : f32
    %21 = vector.broadcast %cst_9 : f32 to vector<8x512xf32>
    %22 = arith.mulf %3, %21 : vector<8x512xf32>
    %23 = math.tanh %22 : vector<8x512xf32>
    %24 = arith.subf %20, %23 : vector<8x512xf32>
    %25 = arith.mulf %24, %24 : vector<8x512xf32>
    %c1_i32 = arith.constant 1 : i32
    %26 = arith.muli %arg0, %c1_i32 : i32
    %27 = arith.addi %26, %arg1 : i32
    %c0_i32_10 = arith.constant 0 : i32
    %28 = arith.cmpi sge, %27, %c0_i32_10 : i32
    %29 = arith.extui %28 : i1 to i32
    %c0_i32_11 = arith.constant 0 : i32
    %30 = arith.cmpi ne, %29, %c0_i32_11 : i32
    scf.if %30 {
      %c8_i32 = arith.constant 8 : i32
      %37 = arith.muli %27, %c8_i32 : i32
      %38 = tpu.iota {dimensions = array<i32: 0>} : vector<8x512xi32>
      %39 = vector.broadcast %37 : i32 to vector<8x512xi32>
      %40 = arith.addi %39, %38 : vector<8x512xi32>
      %41 = tpu.iota {dimensions = array<i32: 1>} : vector<8x512xi32>
      %c1_i32_15 = arith.constant 1 : i32
      %42 = vector.broadcast %c1_i32_15 : i32 to vector<8x512xi32>
      %43 = arith.cmpi slt, %40, %42 : vector<8x512xi32>
      %c1_i32_16 = arith.constant 1 : i32
      %44 = vector.broadcast %c1_i32_16 : i32 to vector<8x512xi32>
      %45 = arith.cmpi eq, %40, %44 : vector<8x512xi32>
      %c0_i32_17 = arith.constant 0 : i32
      %46 = vector.broadcast %c0_i32_17 : i32 to vector<8x512xi32>
      %47 = arith.cmpi slt, %41, %46 : vector<8x512xi32>
      %48 = arith.andi %45, %47 : vector<8x512xi1>
      %49 = arith.ori %43, %48 : vector<8x512xi1>
      %cst_18 = arith.constant 0.000000e+00 : f32
      %50 = vector.broadcast %cst_18 : f32 to vector<8x512xf32>
      %51 = arith.select %49, %17, %50 : vector<8x512xi1>, vector<8x512xf32>
      %cst_19 = arith.constant 0.000000e+00 : f32
      %52 = vector.broadcast %cst_19 : f32 to vector<8x512xf32>
      %53 = arith.select %49, %25, %52 : vector<8x512xi1>, vector<8x512xf32>
      %c0_20 = arith.constant 0 : index
      %c0_21 = arith.constant 0 : index
      %54 = vector.load %arg7[%c0_20, %c0_21] : memref<8x512xf32, #tpu.memory_space<vmem>>, vector<8x512xf32>
      %55 = arith.addf %54, %51 : vector<8x512xf32>
      %c0_22 = arith.constant 0 : index
      %c0_23 = arith.constant 0 : index
      %56 = vector.load %arg7[%c0_22, %c0_23] : memref<8x512xf32, #tpu.memory_space<vmem>>, vector<8x512xf32>
      tpu.vector_store %arg7[%c0_22, %c0_23], %55 {strides = array<i32>} : memref<8x512xf32, #tpu.memory_space<vmem>>, vector<8x512xf32>,
      %c0_24 = arith.constant 0 : index
      %c0_25 = arith.constant 0 : index
      %57 = vector.load %arg8[%c0_24, %c0_25] : memref<8x512xf32, #tpu.memory_space<vmem>>, vector<8x512xf32>
      %58 = arith.addf %57, %53 : vector<8x512xf32>
      %c0_26 = arith.constant 0 : index
      %c0_27 = arith.constant 0 : index
      %59 = vector.load %arg8[%c0_26, %c0_27] : memref<8x512xf32, #tpu.memory_space<vmem>>, vector<8x512xf32>
      tpu.vector_store %arg8[%c0_26, %c0_27], %58 {strides = array<i32>} : memref<8x512xf32, #tpu.memory_space<vmem>>, vector<8x512xf32>,
    } else {
    }
    %true = arith.constant true
    %31 = arith.xori %28, %true : i1
    %32 = arith.extui %31 : i1 to i32
    %c0_i32_12 = arith.constant 0 : i32
    %33 = arith.cmpi ne, %32, %c0_i32_12 : i32
    scf.if %33 {
      %c0_15 = arith.constant 0 : index
      %c0_16 = arith.constant 0 : index
      %37 = vector.load %arg7[%c0_15, %c0_16] : memref<8x512xf32, #tpu.memory_space<vmem>>, vector<8x512xf32>
      %38 = arith.addf %37, %17 : vector<8x512xf32>
      %c0_17 = arith.constant 0 : index
      %c0_18 = arith.constant 0 : index
      %39 = vector.load %arg7[%c0_17, %c0_18] : memref<8x512xf32, #tpu.memory_space<vmem>>, vector<8x512xf32>
      tpu.vector_store %arg7[%c0_17, %c0_18], %38 {strides = array<i32>} : memref<8x512xf32, #tpu.memory_space<vmem>>, vector<8x512xf32>,
      %c0_19 = arith.constant 0 : index
      %c0_20 = arith.constant 0 : index
      %40 = vector.load %arg8[%c0_19, %c0_20] : memref<8x512xf32, #tpu.memory_space<vmem>>, vector<8x512xf32>
      %41 = arith.addf %40, %25 : vector<8x512xf32>
      %c0_21 = arith.constant 0 : index
      %c0_22 = arith.constant 0 : index
      %42 = vector.load %arg8[%c0_21, %c0_22] : memref<8x512xf32, #tpu.memory_space<vmem>>, vector<8x512xf32>
      tpu.vector_store %arg8[%c0_21, %c0_22], %41 {strides = array<i32>} : memref<8x512xf32, #tpu.memory_space<vmem>>, vector<8x512xf32>,
    } else {
    }
    %c0_i32_13 = arith.constant 0 : i32
    %34 = arith.cmpi eq, %arg1, %c0_i32_13 : i32
    %35 = arith.extui %34 : i1 to i32
    %c0_i32_14 = arith.constant 0 : i32
    %36 = arith.cmpi ne, %35, %c0_i32_14 : i32
    scf.if %36 {
      %c0_15 = arith.constant 0 : index
      %c0_16 = arith.constant 0 : index
      %37 = vector.load %arg7[%c0_15, %c0_16] : memref<8x512xf32, #tpu.memory_space<vmem>>, vector<8x512xf32>
      %38 = vector.shape_cast %37 : vector<8x512xf32> to vector<1x8x512xf32>
      %cst_17 = arith.constant dense<0.000000e+00> : vector<1xf32>
      %39 = vector.multi_reduction <add>, %38, %cst_17 [1, 2] : vector<1x8x512xf32> to vector<1xf32>
      %40 = vector.shape_cast %39 : vector<1xf32> to vector<1x1x1xf32>
      %41 = vector.extract %40[0, 0, 0] : f32 from vector<1x1x1xf32>
      %42 = vector.broadcast %41 : f32 to vector<1x8x128xf32>
      %c0_18 = arith.constant 0 : index
      %c0_19 = arith.constant 0 : index
      %c0_20 = arith.constant 0 : index
      %43 = vector.load %arg5[%c0_18, %c0_19, %c0_20] : memref<1x8x128xf32, #tpu.memory_space<vmem>>, vector<1x8x128xf32>
      tpu.vector_store %arg5[%c0_18, %c0_19, %c0_20], %42 {strides = array<i32>} : memref<1x8x128xf32, #tpu.memory_space<vmem>>, vector<1x8x128xf32>,
      %c0_21 = arith.constant 0 : index
      %c0_22 = arith.constant 0 : index
      %44 = vector.load %arg8[%c0_21, %c0_22] : memref<8x512xf32, #tpu.memory_space<vmem>>, vector<8x512xf32>
      %45 = vector.shape_cast %44 : vector<8x512xf32> to vector<1x8x512xf32>
      %cst_23 = arith.constant dense<0.000000e+00> : vector<1xf32>
      %46 = vector.multi_reduction <add>, %45, %cst_23 [1, 2] : vector<1x8x512xf32> to vector<1xf32>
      %47 = vector.shape_cast %46 : vector<1xf32> to vector<1x1x1xf32>
      %48 = vector.extract %47[0, 0, 0] : f32 from vector<1x1x1xf32>
      %49 = vector.broadcast %48 : f32 to vector<1x8x128xf32>
      %c0_24 = arith.constant 0 : index
      %c0_25 = arith.constant 0 : index
      %c0_26 = arith.constant 0 : index
      %50 = vector.load %arg6[%c0_24, %c0_25, %c0_26] : memref<1x8x128xf32, #tpu.memory_space<vmem>>, vector<1x8x128xf32>
      tpu.vector_store %arg6[%c0_24, %c0_25, %c0_26], %49 {strides = array<i32>} : memref<1x8x128xf32, #tpu.memory_space<vmem>>, vector<1x8x128xf32>,
    } else {
    }
    return
  }
  func.func @transform_0(%arg0: i32, %arg1: i32) -> (i32, i32) {
    %c1_i32 = arith.constant 1 : i32
    %0 = arith.muli %arg0, %c1_i32 : i32
    %1 = arith.addi %0, %arg1 : i32
    %c0_i32 = arith.constant 0 : i32
    %c0_i32_0 = arith.constant 0 : i32
    return %1, %c0_i32 : i32, i32
  }
  func.func @transform_1(%arg0: i32, %arg1: i32) -> (i32, i32) {
    %c1_i32 = arith.constant 1 : i32
    %0 = arith.muli %arg0, %c1_i32 : i32
    %1 = arith.addi %0, %arg1 : i32
    %c0_i32 = arith.constant 0 : i32
    %c0_i32_0 = arith.constant 0 : i32
    return %1, %c0_i32 : i32, i32
  }
  func.func @transform_2(%arg0: i32, %arg1: i32) -> (i32, i32) {
    %c1_i32 = arith.constant 1 : i32
    %0 = arith.muli %arg0, %c1_i32 : i32
    %1 = arith.addi %0, %arg1 : i32
    %c0_i32 = arith.constant 0 : i32
    %c0_i32_0 = arith.constant 0 : i32
    return %1, %c0_i32 : i32, i32
  }
  func.func @transform_3(%arg0: i32, %arg1: i32) -> (i32, i32, i32) {
    %c0_i32 = arith.constant 0 : i32
    %c0_i32_0 = arith.constant 0 : i32
    %c0_i32_1 = arith.constant 0 : i32
    return %arg0, %c0_i32, %c0_i32_0 : i32, i32, i32
  }
  func.func @transform_4(%arg0: i32, %arg1: i32) -> (i32, i32, i32) {
    %c0_i32 = arith.constant 0 : i32
    %c0_i32_0 = arith.constant 0 : i32
    %c0_i32_1 = arith.constant 0 : i32
    return %arg0, %c0_i32, %c0_i32_0 : i32, i32, i32
  }
}

</mosaic_0001>

<bundles_post_ra>
// kernel: tpu_custom_call.1
= control target key start
LH: loop header
LB: loop body
LE: loop exit
PB: predicated region body
PF: predicated region fallthrough
CT: control target
= control target key end

     0   :  { %10 = vsyncpa [#allocation5], 0  ;;  %s544_s0 = inlined_call_operand.hbm [shape: f32[8,512], index: 0, kind: input, shape index: {}]   ;;  %s545_s1 = inlined_call_operand.hbm [shape: f32[8,512], index: 1, kind: input, shape index: {}]   ;;  %s546_s2 = inlined_call_operand.hbm [shape: f32[8,512], index: 2, kind: input, shape index: {}]   ;;  %s547_s3 = inlined_call_operand.hbm [shape: f32[1,8,128], index: 3, kind: output, shape index: {0}]   ;;  %s548_s4 = inlined_call_operand.hbm [shape: f32[1,8,128], index: 4, kind: output, shape index: {1}]  }
   0x1   :  { %11 = vsyncpa [#allocation8], 0 }
   0x2   :  { %12 = vsyncpa [#allocation6], 0 }
   0x3   :  { %13 = vsyncpa [#allocation12], 0  ;;  %s467_s15 = smov [#allocation7]   ;;  %s468_s17 = smov [#allocation4]  }
   0x4   :  { %s38_s16 = sshll.u32 %s467_s15, 4  ;;  %s24_s18 = sshll.u32 %s468_s17, 4  ;;  %s39_s16 = int_to_ptr.vmem [resolvable:$true] %s38_s16  ;;  %s25_s18 = int_to_ptr.vmem [resolvable:$true] %s24_s18 }
   0x5   :  { %s367_s19 = scalar_lea.vmem %s39_s16, 512  ;;  %p372_p1 = scmp.lt.s32.totalorder %s39_s16, %s39_s16 }
   0x6   :  { %p368_p0 = scmp.ne.s32.totalorder %s39_s16, %s367_s19  ;;  %p373_p2 = scmp.lt.s32.totalorder %s367_s19, %s367_s19 }
   0x8   :  { %p374_p3 = por %p373_p2, %p372_p1 }
   0xa   :  { %p375_p4 = pnand %p374_p3, %p368_p0 }
   0xc   :  { %378 = shalt.err (!%p375_p4)
}
   0xd   :  { %41 = dma.hbm_to_vmem [thread:$0]  %s545_s1, 512, %s39_s16, [#allocation8]  }
   0xe   :  { %s387_s22 = scalar_lea.vmem %s25_s18, 512  ;;  %p392_p6 = scmp.lt.s32.totalorder %s25_s18, %s25_s18 }
   0xf   :  { %p388_p5 = scmp.ne.s32.totalorder %s25_s18, %s387_s22  ;;  %p393_p7 = scmp.lt.s32.totalorder %s387_s22, %s387_s22 }
  0x11   :  { %p394_p8 = por %p393_p7, %p392_p6 }
  0x13   :  { %p395_p9 = pnand %p394_p8, %p388_p5 }
  0x15   :  { %398 = shalt.err (!%p395_p9)
}
  0x16   :  { %27 = dma.hbm_to_vmem [thread:$0]  %s544_s0, 512, %s25_s18, [#allocation5]  }
  0x17   :  { %s469_s25 = smov [#allocation9]  }
  0x18   :  { %s52_s26 = sshll.u32 %s469_s25, 4  ;;  %s53_s26 = int_to_ptr.vmem [resolvable:$true] %s52_s26 }
  0x19   :  { %s407_s27 = scalar_lea.vmem %s53_s26, 512  ;;  %p412_p11 = scmp.lt.s32.totalorder %s53_s26, %s53_s26 }
  0x1a   :  { %p408_p10 = scmp.ne.s32.totalorder %s53_s26, %s407_s27  ;;  %p413_p12 = scmp.lt.s32.totalorder %s407_s27, %s407_s27 }
  0x1c   :  { %p414_p13 = por %p413_p12, %p412_p11 }
  0x1e   :  { %p415_p0 = pnand %p414_p13, %p408_p10 }
  0x20   :  { %418 = shalt.err (!%p415_p0)
}
  0x21   :  { %55 = dma.hbm_to_vmem [thread:$0]  %s546_s2, 512, %s53_s26, [#allocation8]  }
  0x22   :  { %459 = dma.done.wait [#allocation5], 512  }
  0x23   :  { %460 = vsyncadd [#allocation5], 4294966784 }
  0x24   :  { %461 = dma.done.wait [#allocation8], 1024  }
  0x25   :  { %462 = vsyncadd [#allocation8], 4294966272  ;;  %v506_v0 = vld [vmem:[#allocation7] sm:$0xff]  ;;  %v508_v1 = vld [vmem:[#allocation7 + $0x8] sm:$0xff]  ;;  %v166_v40 = vlaneseq  ;;  %s470_s0 = smov [#allocation10]   ;;  %s471_s30 = smov [#allocation11]  }
  0x26   :  { %v510_v2 = vld [vmem:[#allocation7 + $0x10] sm:$0xff]  ;;  %v512_v3 = vld [vmem:[#allocation7 + $0x18] sm:$0xff]  ;;  %v104_v4 = vand.u32 2147483647, %v506_v0  ;;  %v105_v5 = vand.u32 2147483647, %v508_v1 }
  0x27   :  { %v106_v6 = vand.u32 2147483647, %v510_v2  ;;  %v107_v7 = vand.u32 2147483647, %v512_v3  ;;  %v80_v16 = vld [vmem:[#allocation4] sm:$0xff]  ;;  %v136_v17 = vmul.f32 0.25, %v506_v0 }
  0x28   :  { %v108_v8 = vsub.f32 0.0, %v104_v4  ;;  %v109_v9 = vsub.f32 0.0, %v105_v5  ;;  %v81_v18 = vld [vmem:[#allocation4 + $0x8] sm:$0xff]  ;;  %v137_v19 = vmul.f32 0.25, %v508_v1  ;;  %v82_v20 = vld [vmem:[#allocation4 + $0x10] sm:$0xff]  ;;  %v144_v21 = vmul.f32 0.25, %v80_v16 }
  0x29   :  { %v110_v10 = vsub.f32 0.0, %v106_v6  ;;  %v111_v11 = vsub.f32 0.0, %v107_v7  ;;  %v145_v22 = vmul.f32 0.25, %v81_v18  ;;  %v138_v23 = vmul.f32 0.25, %v510_v2  ;;  %v83_v24 = vld [vmem:[#allocation4 + $0x18] sm:$0xff]  ;;  %v88_v39 = vld [vmem:[#allocation9] sm:$0xff] }
  0x2a   :  { %v112_v12 = vmul.f32 1.442695, %v108_v8  ;;  %v114_v13 = vmul.f32 1.442695, %v109_v9  ;;  %v146_v25 = vmul.f32 0.25, %v82_v20  ;;  %v139_v26 = vmul.f32 0.25, %v512_v3 }
  0x2b   :  { %v116_v14 = vmul.f32 1.442695, %v110_v10  ;;  %v118_v15 = vmul.f32 1.442695, %v111_v11  ;;  %v147_v27 = vmul.f32 0.25, %v83_v24  ;;  %v89_v42 = vld [vmem:[#allocation9 + $0x8] sm:$0xff]  ;;  %v96_v50 = vmul.f32 %v88_v39, %v506_v0 }
  0x2c   :  { %327 = vpow2.f32 %v112_v12  ;;  %v90_v44 = vld [vmem:[#allocation9 + $0x10] sm:$0xff]  ;;  %v91_v45 = vld [vmem:[#allocation9 + $0x18] sm:$0xff]  ;;  %v92_v49 = vmax.f32 %v506_v0, 0.0  ;;  %v93_v51 = vmax.f32 %v508_v1, 0.0  ;;  %v97_v52 = vmul.f32 %v89_v42, %v508_v1  ;;  %s294_s2 = sshll.u32 %s470_s0, 4  ;;  %s304_s5 = sshll.u32 %s471_s30, 4  ;;  %s295_s2 = int_to_ptr.vmem [resolvable:$true] %s294_s2  ;;  %s305_s5 = int_to_ptr.vmem [resolvable:$true] %s304_s5 }
  0x2d   :  { %329 = vpow2.f32 %v114_v13  ;;  %v167_v53 = vshrl.u32 %v166_v40, 7  ;;  %v94_v55 = vmax.f32 %v510_v2, 0.0  ;;  %v95_v56 = vmax.f32 %v512_v3, 0.0  ;;  %s419_s6 = scalar_lea.vmem %s295_s2, 128  ;;  %p424_p2 = scmp.lt.s32.totalorder %s295_s2, %s295_s2 }
  0x2e   :  { %331 = vpow2.f32 %v116_v14  ;;  %v98_v57 = vmul.f32 %v90_v44, %v510_v2  ;;  %v99_v58 = vmul.f32 %v91_v45, %v512_v3  ;;  %v100_v63 = vsub.f32 %v92_v49, %v96_v50  ;;  %p420_p1 = scmp.ne.s32.totalorder %s295_s2, %s419_s6  ;;  %p425_p3 = scmp.lt.s32.totalorder %s419_s6, %s419_s6 }
  0x2f   :  { %333 = vpow2.f32 %v118_v15  ;;  %v101_v4 = vsub.f32 %v93_v51, %v97_v52  ;;  %vm175_vm0 = vcmp.lt.s32.totalorder %v167_v53, 1 }
  0x30   :  { %335 = vtanh.f32 %v136_v17  ;;  %v102_v1 = vsub.f32 %v94_v55, %v98_v57  ;;  %v103_v6 = vsub.f32 %v95_v56, %v99_v58  ;;  %p426_p4 = por %p425_p3, %p424_p2 }
  0x31   :  { %337 = vtanh.f32 %v137_v19 }
  0x32   :  { %339 = vtanh.f32 %v144_v21  ;;  %p427_p5 = pnand %p426_p4, %p420_p1 }
  0x33   :  { %341 = vtanh.f32 %v145_v22 }
  0x34   :  { %343 = vtanh.f32 %v138_v23 }
  0x35   :  { %345 = vtanh.f32 %v146_v25 }
  0x36   :  { %347 = vtanh.f32 %v139_v26 }
  0x37   :  { %349 = vtanh.f32 %v147_v27 }
  0x39   :  { %v328_v28 = vpop.eup %327 }
  0x3a   :  { %v330_v29 = vpop.eup %329  ;;  %v120_v30 = vadd.f32 1.0, %v328_v28 }
  0x3b   :  { %v332_v31 = vpop.eup %331  ;;  %v121_v32 = vadd.f32 1.0, %v330_v29 }
  0x3c   :  { %v334_v33 = vpop.eup %333  ;;  %v122_v34 = vadd.f32 1.0, %v332_v31  ;;  %351 = vlog2.f32 %v120_v30 }
  0x3d   :  { %v123_v35 = vadd.f32 1.0, %v334_v33  ;;  %353 = vlog2.f32 %v121_v32  ;;  %v336_v36 = vpop.eup %335 }
  0x3e   :  { %355 = vlog2.f32 %v122_v34  ;;  %v338_v37 = vpop.eup %337 }
  0x3f   :  { %357 = vlog2.f32 %v123_v35  ;;  %v340_v38 = vpop.eup %339 }
  0x40   :  { %v342_v41 = vpop.eup %341  ;;  %v152_v46 = vsub.f32 %v336_v36, %v340_v38 }
  0x41   :  { %v344_v43 = vpop.eup %343  ;;  %v153_v47 = vsub.f32 %v338_v37, %v342_v41 }
  0x42   :  { %v346_v48 = vpop.eup %345  ;;  %v156_v61 = vmul.f32 %v152_v46, %v152_v46 }
  0x43   :  { %v348_v54 = vpop.eup %347  ;;  %v154_v60 = vsub.f32 %v344_v43, %v346_v48  ;;  %v157_v62 = vmul.f32 %v153_v47, %v153_v47 }
  0x44   :  { %v350_v59 = vpop.eup %349  ;;  %v193_v2 = vsel %vm175_vm0, %v156_v61, 0.0 }
  0x45   :  { %v155_v8 = vsub.f32 %v348_v54, %v350_v59  ;;  %v158_v11 = vmul.f32 %v154_v60, %v154_v60  ;;  %v194_v3 = vsel %vm175_vm0, %v157_v62, 0.0 }
  0x46   :  { %v274_v19 = vadd.f32 %v194_v3, %v193_v2 }
  0x47   :  { %v159_v22 = vmul.f32 %v155_v8, %v155_v8  ;;  %v195_v23 = vsel %vm175_vm0, %v158_v11, 0.0 }
  0x48   :  { %v275_v28 = vadd.f32 %v274_v19, %v195_v23 }
  0x49   :  { %v352_v0 = vpop.eup %351  ;;  %v196_v29 = vsel %vm175_vm0, %v159_v22, 0.0 }
  0x4a   :  { %v354_v5 = vpop.eup %353  ;;  %v125_v7 = vmul.f32 0.6931472, %v352_v0  ;;  %v276_v31 = vadd.f32 %v275_v28, %v196_v29 }
  0x4b   :  { %v356_v9 = vpop.eup %355  ;;  %v127_v10 = vmul.f32 0.6931472, %v354_v5 }
  0x4c   :  { %v358_v12 = vpop.eup %357  ;;  %v129_v13 = vmul.f32 0.6931472, %v356_v9  ;;  %v132_v14 = vadd.f32 %v125_v7, %v100_v63 }
  0x4d   :  { %v131_v15 = vmul.f32 0.6931472, %v358_v12  ;;  %v133_v16 = vadd.f32 %v127_v10, %v101_v4 }
  0x4e   :  { %v134_v17 = vadd.f32 %v129_v13, %v102_v1  ;;  %v189_v18 = vsel %vm175_vm0, %v132_v14, 0.0 }
  0x4f   :  { %v135_v20 = vadd.f32 %v131_v15, %v103_v6  ;;  %v190_v21 = vsel %vm175_vm0, %v133_v16, 0.0 }
  0x50   :  { %v191_v24 = vsel %vm175_vm0, %v134_v17, 0.0  ;;  %v256_v25 = vadd.f32 %v190_v21, %v189_v18 }
  0x51   :  { %v192_v26 = vsel %vm175_vm0, %v135_v20, 0.0 }
  0x52   :  { %v257_v27 = vadd.f32 %v256_v25, %v191_v24 }
  0x54   :  { %v258_v30 = vadd.f32 %v257_v27, %v192_v26 }
  0x56   :  { %259 = vadd.xlane.f32.xlu0 %v258_v30 }
  0x5a   :  { %277 = vadd.xlane.f32.xlu0 %v276_v31 }
  0xdf   :  { %v260_v32 = vpop.xlane.xlu0 %259 }
  0xe0   :  { %v261_v33 = vrot.slane %v260_v32, 4 }
  0xe2   :  { %v262_v34 = vadd.f32 %v261_v33, %v260_v32 }
  0xe3   :  { %v278_v35 = vpop.xlane.xlu0 %277 }
  0xe4   :  { %v263_v36 = vrot.slane %v262_v34, 2  ;;  %v279_v37 = vrot.slane %v278_v35, 4 }
  0xe6   :  { %v280_v38 = vadd.f32 %v279_v37, %v278_v35  ;;  %v264_v39 = vadd.f32 %v263_v36, %v262_v34 }
  0xe8   :  { %v281_v40 = vrot.slane %v280_v38, 2  ;;  %v265_v41 = vrot.slane %v264_v39, 1 }
  0xea   :  { %v282_v42 = vadd.f32 %v281_v40, %v280_v38  ;;  %v266_v43 = vadd.f32 %v265_v41, %v264_v39 }
  0xec   :  { %318 = vpush %v266_v43  ;;  %v283_v44 = vrot.slane %v282_v42, 1 }
  0xee   :  { %v284_v45 = vadd.f32 %v283_v44, %v282_v42 }
  0xf0   :  { %320 = vpush %v284_v45 }
 0x11d   :  { %s319_s29 = spop %318 }
 0x11e   :  { %v268_v46 = vstv %s319_s29 }
 0x11f   :  { %269 = vst [vmem:[#allocation10] sm:$0xff] %v268_v46 }
 0x120   :  { %430 = shalt.err (!%p427_p5)
}
 0x121   :  { %297 = dma.vmem_to_hbm [thread:$0]  %s295_s2, 128, %s547_s3, [#allocation6]  }
 0x122   :  { %s321_s9 = spop %320  ;;  %s439_s10 = scalar_lea.vmem %s305_s5, 128 }
 0x123   :  { %v286_v47 = vstv %s321_s9  ;;  %p440_p6 = scmp.ne.s32.totalorder %s305_s5, %s439_s10  ;;  %p444_p7 = scmp.lt.s32.totalorder %s305_s5, %s305_s5 }
 0x124   :  { %287 = vst [vmem:[#allocation11] sm:$0xff] %v286_v47  ;;  %p445_p8 = scmp.lt.s32.totalorder %s439_s10, %s439_s10 }
 0x126   :  { %p446_p9 = por %p445_p8, %p444_p7 }
 0x128   :  { %p447_p10 = pnand %p446_p9, %p440_p6 }
 0x12a   :  { %450 = shalt.err (!%p447_p10)
}
 0x12b   :  { %307 = dma.vmem_to_hbm [thread:$0]  %s305_s5, 128, %s548_s4, [#allocation12]  }
 0x12c   :  { %463 = dma.done.wait [#allocation6], 128  }
 0x12d   :  { %464 = vsyncadd [#allocation6], 4294967168 }
 0x12e   :  { %465 = dma.done.wait [#allocation12], 128  }
 0x12f   :  { %466 = vsyncadd [#allocation12], 4294967168 }
 0x130   :  { %314 = vsyncpa [#allocation5], 1 }
 0x131   :  { %315 = vsyncpa [#allocation8], 1 }
 0x132   :  { %316 = vsyncpa [#allocation6], 1 }
 0x133   :  { %317 = vsyncpa [#allocation12], 1 }

</bundles_post_ra>
